<compile_context>
chip_gen: v7x
topology: tpu7x:2x2x1
jax: 0.10.0
libtpu: 0.0.40
codegen_flags: <defaults>
</compile_context>

<pallas_src>
import functools

import jax
import jax.numpy as jnp
from jax.experimental import pallas as pl
from jax.experimental.pallas import tpu as pltpu

# Small, self-consistent hyper-parameters (module uses nEmb=384, blockSiz=256;
# scaled down but numHead * headSiz == nEmb so concat/projection shapes match).
N_EMB = 32
NUM_HEAD = 4
HEAD_SIZ = N_EMB // NUM_HEAD  # 8
BATCH = 2
SEQ = 8  # T (<= blockSiz)

_NEG_INF = -1e30  # large finite negative: robust even if a row were fully masked


def _mha_kernel(x_ref, wqkv_ref, wp_ref, bp_ref, o_ref, *,
                batch, seq, n_emb, num_head, head_siz):
    """Single grid step: the entire problem is resident in VMEM.

    x_ref:    (B*T, C)  bf16   batch flattened into the matmul M dim
    wqkv_ref: (C, 3*C)  bf16   fused [Wq * C**-0.5 | Wk | Wv], input-major
    wp_ref:   (C, C)    f32    output projection, input-major
    bp_ref:   (1, C)    f32    output projection bias
    o_ref:    (B*T, C)  f32
    """
    B, T, C = batch, seq, n_emb
    NH, H = num_head, head_siz

    x = x_ref[...]
    # One fused QKV projection on the MXU (bf16 in, f32 accumulate):
    #   qkv[:, 0:C]   = q (scale already folded into Wq)
    #   qkv[:, C:2C]  = k
    #   qkv[:, 2C:3C] = v
    qkv = jnp.dot(x, wqkv_ref[...], preferred_element_type=jnp.float32)

    # Causal mask built once (single grid step; T is static).
    row = jax.lax.broadcasted_iota(jnp.int32, (T, T), 0)
    col = jax.lax.broadcasted_iota(jnp.int32, (T, T), 1)
    causal = row >= col

    wp = wp_ref[...]                                       # (C, C) f32
    bias = jnp.broadcast_to(bp_ref[...], (T, C))           # hoisted out of loops

    # Static unrolled loops: B and numHead are tiny compile-time constants.
    for b in range(B):
        qkv_b = qkv[b * T:(b + 1) * T, :]                  # (T, 3C) f32
        acc = bias  # accumulates bias + sum_h head_h @ Wp[h*H:(h+1)*H, :]
        for h in range(NH):
            q = qkv_b[:, h * H:(h + 1) * H]                # (T, H), pre-scaled
            k = qkv_b[:, C + h * H:C + (h + 1) * H]        # (T, H)
            v = qkv_b[:, 2 * C + h * H:2 * C + (h + 1) * H]

            # q @ k^T without an explicit transpose (contract last dims).
            s = jax.lax.dot_general(q, k, (((1,), (1,)), ((), ())),
                                    preferred_element_type=jnp.float32)
            s = jnp.where(causal, s, _NEG_INF)
            s = s - jnp.max(s, axis=-1, keepdims=True)
            p = jnp.exp(s)
            p = p * pl.reciprocal(jnp.sum(p, axis=-1, keepdims=True), approx=True)
            # Head.dropout(p) and the MHA-level dropout are identity in eval mode.

            head = jnp.dot(p, v, preferred_element_type=jnp.float32)   # (T, H)
            # concat(heads) @ Wp == sum over heads of head_h @ Wp rows -> no concat.
            acc = acc + jnp.dot(head, wp[h * H:(h + 1) * H, :],
                                preferred_element_type=jnp.float32)
        o_ref[b * T:(b + 1) * T, :] = acc.astype(o_ref.dtype)


@jax.jit
def multi_head_attention(x, wq, wk, wv, wp, bp):
    """x: (B, T, C); wq/wk/wv: (numHead, C, headSiz) input-major;
    wp: (C, C) input-major; bp: (1, C)."""
    B, T, C = x.shape
    NH, _, H = wq.shape
    scale = C ** (-0.5)  # NOTE: module scales by embedding dim C, not headSiz.

    # Fuse per-head q/k/v projections into one (C, 3C) weight; fold the scale
    # into the query columns (free — weights are constants to the kernel).
    def _flat(w):  # (NH, C, H) -> (C, NH*H)
        return jnp.transpose(w, (1, 0, 2)).reshape(C, NH * H)

    w_qkv = jnp.concatenate([_flat(wq) * scale, _flat(wk), _flat(wv)], axis=-1)

    # bf16 MXU inputs (f32 accumulation inside the kernel); halves DMA bytes too.
    x2d = x.reshape(B * T, C).astype(jnp.bfloat16)
    w_qkv = w_qkv.astype(jnp.bfloat16)

    kernel = functools.partial(_mha_kernel, batch=B, seq=T, n_emb=C,
                               num_head=NH, head_siz=H)

    # TODO(synk): at real model size (nEmb=384=3*128, T=256) the output is
    # lane-dense automatically; at this toy C=32 stores are masked but trivial.
    out2d = pl.pallas_call(
        kernel,
        out_shape=jax.ShapeDtypeStruct((B * T, C), x.dtype),
        grid_spec=pltpu.PrefetchScalarGridSpec(
            num_scalar_prefetch=0,
            grid=(1,),  # single step: no per-step pipeline overhead
            in_specs=[
                pl.BlockSpec((B * T, C), lambda i: (0, 0)),
                pl.BlockSpec((C, 3 * C), lambda i: (0, 0)),
                pl.BlockSpec((C, C), lambda i: (0, 0)),
                pl.BlockSpec((1, C), lambda i: (0, 0)),
            ],
            out_specs=pl.BlockSpec((B * T, C), lambda i: (0, 0)),
        ),
        compiler_params=pltpu.CompilerParams(
            # Microsecond-scale work: keep it on one TensorCore (no megacore split).
            dimension_semantics=("arbitrary",),
        ),
    )(x2d, w_qkv, wp, bp)
    return out2d.reshape(B, T, C)


def _reference(x, wq, wk, wv, wp, bp):
    """Pure-JAX f32 reference mirroring the PyTorch forward (eval mode)."""
    B, T, C = x.shape
    causal = jnp.tril(jnp.ones((T, T), dtype=bool))
    outs = []
    for h in range(wq.shape[0]):
        q = x @ wq[h]
        k = x @ wk[h]
        v = x @ wv[h]
        w = (q @ jnp.swapaxes(k, -2, -1)) * C ** (-0.5)
        w = jnp.where(causal, w, -jnp.inf)
        w = jax.nn.softmax(w, axis=-1)
        outs.append(w @ v)
    cat = jnp.concatenate(outs, axis=-1)
    return cat @ wp + bp[0]


if __name__ == "__main__":
    key = jax.random.PRNGKey(0)
    kx, kq, kk, kv, kp, kb = jax.random.split(key, 6)

    x = jax.random.normal(kx, (BATCH, SEQ, N_EMB), dtype=jnp.float32)

    # Deterministic synthetic parameters (stored input-major: y = x @ W).
    init_scale = 0.05
    wq = init_scale * jax.random.normal(kq, (NUM_HEAD, N_EMB, HEAD_SIZ), jnp.float32)
    wk = init_scale * jax.random.normal(kk, (NUM_HEAD, N_EMB, HEAD_SIZ), jnp.float32)
    wv = init_scale * jax.random.normal(kv, (NUM_HEAD, N_EMB, HEAD_SIZ), jnp.float32)
    wp = init_scale * jax.random.normal(kp, (N_EMB, N_EMB), jnp.float32)
    bp = init_scale * jax.random.normal(kb, (1, N_EMB), jnp.float32)

    out = multi_head_attention(x, wq, wk, wv, wp, bp)
    out = jax.block_until_ready(out)

    ref = _reference(x, wq, wk, wv, wp, bp)
    assert out.shape == (BATCH, SEQ, N_EMB)
    # bf16 MXU inputs + approx reciprocal -> relaxed tolerance vs f32 reference.
    assert jnp.allclose(out, ref, atol=1e-2, rtol=1e-2), "mismatch vs reference"

    print("KERNEL_OK")
</pallas_src>

<mosaic_0001>
module attributes {stable_mosaic.version = 11 : i64} {
  func.func @_mha_kernel(%arg0: i32, %arg1: memref<16x32xbf16, #tpu.memory_space<vmem>>, %arg2: memref<32x96xbf16, #tpu.memory_space<vmem>>, %arg3: memref<32x32xf32, #tpu.memory_space<vmem>>, %arg4: memref<1x32xf32, #tpu.memory_space<vmem>>, %arg5: memref<16x32xf32, #tpu.memory_space<vmem>>) attributes {dimension_semantics = [#tpu.dimension_semantics<arbitrary>], iteration_bounds = array<i64: 1>, scalar_prefetch = 0 : i64, scratch_operands = 0 : i64, tpu.core_type = #tpu.core_type<tc>, window_params = [{pipeline_mode = #tpu.pipeline_mode<synchronous>, transform_indices = @transform_0, window_bounds = array<i64: 16, 32>}, {pipeline_mode = #tpu.pipeline_mode<synchronous>, transform_indices = @transform_1, window_bounds = array<i64: 32, 96>}, {pipeline_mode = #tpu.pipeline_mode<synchronous>, transform_indices = @transform_2, window_bounds = array<i64: 32, 32>}, {pipeline_mode = #tpu.pipeline_mode<synchronous>, transform_indices = @transform_3, window_bounds = array<i64: 1, 32>}, {pipeline_mode = #tpu.pipeline_mode<synchronous>, transform_indices = @transform_4, window_bounds = array<i64: 16, 32>}]} {
    %c0 = arith.constant 0 : index
    %c0_0 = arith.constant 0 : index
    %0 = vector.load %arg1[%c0, %c0_0] : memref<16x32xbf16, #tpu.memory_space<vmem>>, vector<16x32xbf16>
    %c0_1 = arith.constant 0 : index
    %c0_2 = arith.constant 0 : index
    %1 = vector.load %arg2[%c0_1, %c0_2] : memref<32x96xbf16, #tpu.memory_space<vmem>>, vector<32x96xbf16>
    %cst = arith.constant dense<0.000000e+00> : vector<16x96xf32>
    %2 = tpu.matmul %0, %1, %cst {dimension_numbers = #tpu.dot_dimension_numbers<[1], [0], [0], [1], [0, 0, 1, 1], [], []>} : vector<16x32xbf16>, vector<32x96xbf16>, vector<16x96xf32> -> vector<16x96xf32>
    %3 = tpu.iota {dimensions = array<i32: 0>} : vector<8x8xi32>
    %4 = tpu.iota {dimensions = array<i32: 1>} : vector<8x8xi32>
    %5 = arith.cmpi sge, %3, %4 : vector<8x8xi32>
    %c0_3 = arith.constant 0 : index
    %c0_4 = arith.constant 0 : index
    %6 = vector.load %arg3[%c0_3, %c0_4] : memref<32x32xf32, #tpu.memory_space<vmem>>, vector<32x32xf32>
    %c0_5 = arith.constant 0 : index
    %c0_6 = arith.constant 0 : index
    %7 = vector.load %arg4[%c0_5, %c0_6] : memref<1x32xf32, #tpu.memory_space<vmem>>, vector<1x32xf32>
    %8 = vector.shape_cast %7 : vector<1x32xf32> to vector<1x32xf32>
    %9 = vector.broadcast %8 : vector<1x32xf32> to vector<8x32xf32>
    %10 = vector.extract_strided_slice %2 {offsets = [0, 0], sizes = [8, 96], strides = [1, 1]} : vector<16x96xf32> to vector<8x96xf32>
    %11 = vector.extract_strided_slice %10 {offsets = [0, 0], sizes = [8, 8], strides = [1, 1]} : vector<8x96xf32> to vector<8x8xf32>
    %12 = vector.extract_strided_slice %10 {offsets = [0, 32], sizes = [8, 8], strides = [1, 1]} : vector<8x96xf32> to vector<8x8xf32>
    %13 = vector.extract_strided_slice %10 {offsets = [0, 64], sizes = [8, 8], strides = [1, 1]} : vector<8x96xf32> to vector<8x8xf32>
    %cst_7 = arith.constant dense<0.000000e+00> : vector<8x8xf32>
    %14 = tpu.matmul %11, %12, %cst_7 {dimension_numbers = #tpu.dot_dimension_numbers<[1], [1], [0], [0], [0, 0, 1, 0], [], []>} : vector<8x8xf32>, vector<8x8xf32>, vector<8x8xf32> -> vector<8x8xf32>
    %cst_8 = arith.constant -1.000000e+30 : f32
    %15 = vector.broadcast %cst_8 : f32 to vector<8x8xf32>
    %16 = arith.select %5, %14, %15 : vector<8x8xi1>, vector<8x8xf32>
    %cst_9 = arith.constant dense<0xFF800000> : vector<8xf32>
    %17 = vector.multi_reduction <maximumf>, %16, %cst_9 [1] : vector<8x8xf32> to vector<8xf32>
    %18 = vector.shape_cast %17 : vector<8xf32> to vector<8x1xf32>
    %19 = vector.broadcast %18 : vector<8x1xf32> to vector<8x8xf32>
    %20 = arith.subf %16, %19 : vector<8x8xf32>
    %21 = math.exp %20 : vector<8x8xf32>
    %cst_10 = arith.constant dense<0.000000e+00> : vector<8xf32>
    %22 = vector.multi_reduction <add>, %21, %cst_10 [1] : vector<8x8xf32> to vector<8xf32>
    %23 = vector.shape_cast %22 : vector<8xf32> to vector<8x1xf32>
    %24 = tpu.reciprocal %23 {approx = true} : vector<8x1xf32> -> vector<8x1xf32>
    %25 = vector.broadcast %24 : vector<8x1xf32> to vector<8x8xf32>
    %26 = arith.mulf %21, %25 : vector<8x8xf32>
    %cst_11 = arith.constant dense<0.000000e+00> : vector<8x8xf32>
    %27 = tpu.matmul %26, %13, %cst_11 {dimension_numbers = #tpu.dot_dimension_numbers<[1], [0], [0], [1], [0, 0, 1, 1], [], []>} : vector<8x8xf32>, vector<8x8xf32>, vector<8x8xf32> -> vector<8x8xf32>
    %28 = vector.extract_strided_slice %6 {offsets = [0, 0], sizes = [8, 32], strides = [1, 1]} : vector<32x32xf32> to vector<8x32xf32>
    %cst_12 = arith.constant dense<0.000000e+00> : vector<8x32xf32>
    %29 = tpu.matmul %27, %28, %cst_12 {dimension_numbers = #tpu.dot_dimension_numbers<[1], [0], [0], [1], [0, 0, 1, 1], [], []>} : vector<8x8xf32>, vector<8x32xf32>, vector<8x32xf32> -> vector<8x32xf32>
    %30 = arith.addf %9, %29 : vector<8x32xf32>
    %31 = vector.extract_strided_slice %10 {offsets = [0, 8], sizes = [8, 8], strides = [1, 1]} : vector<8x96xf32> to vector<8x8xf32>
    %32 = vector.extract_strided_slice %10 {offsets = [0, 40], sizes = [8, 8], strides = [1, 1]} : vector<8x96xf32> to vector<8x8xf32>
    %33 = vector.extract_strided_slice %10 {offsets = [0, 72], sizes = [8, 8], strides = [1, 1]} : vector<8x96xf32> to vector<8x8xf32>
    %cst_13 = arith.constant dense<0.000000e+00> : vector<8x8xf32>
    %34 = tpu.matmul %31, %32, %cst_13 {dimension_numbers = #tpu.dot_dimension_numbers<[1], [1], [0], [0], [0, 0, 1, 0], [], []>} : vector<8x8xf32>, vector<8x8xf32>, vector<8x8xf32> -> vector<8x8xf32>
    %cst_14 = arith.constant -1.000000e+30 : f32
    %35 = vector.broadcast %cst_14 : f32 to vector<8x8xf32>
    %36 = arith.select %5, %34, %35 : vector<8x8xi1>, vector<8x8xf32>
    %cst_15 = arith.constant dense<0xFF800000> : vector<8xf32>
    %37 = vector.multi_reduction <maximumf>, %36, %cst_15 [1] : vector<8x8xf32> to vector<8xf32>
    %38 = vector.shape_cast %37 : vector<8xf32> to vector<8x1xf32>
    %39 = vector.broadcast %38 : vector<8x1xf32> to vector<8x8xf32>
    %40 = arith.subf %36, %39 : vector<8x8xf32>
    %41 = math.exp %40 : vector<8x8xf32>
    %cst_16 = arith.constant dense<0.000000e+00> : vector<8xf32>
    %42 = vector.multi_reduction <add>, %41, %cst_16 [1] : vector<8x8xf32> to vector<8xf32>
    %43 = vector.shape_cast %42 : vector<8xf32> to vector<8x1xf32>
    %44 = tpu.reciprocal %43 {approx = true} : vector<8x1xf32> -> vector<8x1xf32>
    %45 = vector.broadcast %44 : vector<8x1xf32> to vector<8x8xf32>
    %46 = arith.mulf %41, %45 : vector<8x8xf32>
    %cst_17 = arith.constant dense<0.000000e+00> : vector<8x8xf32>
    %47 = tpu.matmul %46, %33, %cst_17 {dimension_numbers = #tpu.dot_dimension_numbers<[1], [0], [0], [1], [0, 0, 1, 1], [], []>} : vector<8x8xf32>, vector<8x8xf32>, vector<8x8xf32> -> vector<8x8xf32>
    %48 = vector.extract_strided_slice %6 {offsets = [8, 0], sizes = [8, 32], strides = [1, 1]} : vector<32x32xf32> to vector<8x32xf32>
    %cst_18 = arith.constant dense<0.000000e+00> : vector<8x32xf32>
    %49 = tpu.matmul %47, %48, %cst_18 {dimension_numbers = #tpu.dot_dimension_numbers<[1], [0], [0], [1], [0, 0, 1, 1], [], []>} : vector<8x8xf32>, vector<8x32xf32>, vector<8x32xf32> -> vector<8x32xf32>
    %50 = arith.addf %30, %49 : vector<8x32xf32>
    %51 = vector.extract_strided_slice %10 {offsets = [0, 16], sizes = [8, 8], strides = [1, 1]} : vector<8x96xf32> to vector<8x8xf32>
    %52 = vector.extract_strided_slice %10 {offsets = [0, 48], sizes = [8, 8], strides = [1, 1]} : vector<8x96xf32> to vector<8x8xf32>
    %53 = vector.extract_strided_slice %10 {offsets = [0, 80], sizes = [8, 8], strides = [1, 1]} : vector<8x96xf32> to vector<8x8xf32>
    %cst_19 = arith.constant dense<0.000000e+00> : vector<8x8xf32>
    %54 = tpu.matmul %51, %52, %cst_19 {dimension_numbers = #tpu.dot_dimension_numbers<[1], [1], [0], [0], [0, 0, 1, 0], [], []>} : vector<8x8xf32>, vector<8x8xf32>, vector<8x8xf32> -> vector<8x8xf32>
    %cst_20 = arith.constant -1.000000e+30 : f32
    %55 = vector.broadcast %cst_20 : f32 to vector<8x8xf32>
    %56 = arith.select %5, %54, %55 : vector<8x8xi1>, vector<8x8xf32>
    %cst_21 = arith.constant dense<0xFF800000> : vector<8xf32>
    %57 = vector.multi_reduction <maximumf>, %56, %cst_21 [1] : vector<8x8xf32> to vector<8xf32>
    %58 = vector.shape_cast %57 : vector<8xf32> to vector<8x1xf32>
    %59 = vector.broadcast %58 : vector<8x1xf32> to vector<8x8xf32>
    %60 = arith.subf %56, %59 : vector<8x8xf32>
    %61 = math.exp %60 : vector<8x8xf32>
    %cst_22 = arith.constant dense<0.000000e+00> : vector<8xf32>
    %62 = vector.multi_reduction <add>, %61, %cst_22 [1] : vector<8x8xf32> to vector<8xf32>
    %63 = vector.shape_cast %62 : vector<8xf32> to vector<8x1xf32>
    %64 = tpu.reciprocal %63 {approx = true} : vector<8x1xf32> -> vector<8x1xf32>
    %65 = vector.broadcast %64 : vector<8x1xf32> to vector<8x8xf32>
    %66 = arith.mulf %61, %65 : vector<8x8xf32>
    %cst_23 = arith.constant dense<0.000000e+00> : vector<8x8xf32>
    %67 = tpu.matmul %66, %53, %cst_23 {dimension_numbers = #tpu.dot_dimension_numbers<[1], [0], [0], [1], [0, 0, 1, 1], [], []>} : vector<8x8xf32>, vector<8x8xf32>, vector<8x8xf32> -> vector<8x8xf32>
    %68 = vector.extract_strided_slice %6 {offsets = [16, 0], sizes = [8, 32], strides = [1, 1]} : vector<32x32xf32> to vector<8x32xf32>
    %cst_24 = arith.constant dense<0.000000e+00> : vector<8x32xf32>
    %69 = tpu.matmul %67, %68, %cst_24 {dimension_numbers = #tpu.dot_dimension_numbers<[1], [0], [0], [1], [0, 0, 1, 1], [], []>} : vector<8x8xf32>, vector<8x32xf32>, vector<8x32xf32> -> vector<8x32xf32>
    %70 = arith.addf %50, %69 : vector<8x32xf32>
    %71 = vector.extract_strided_slice %10 {offsets = [0, 24], sizes = [8, 8], strides = [1, 1]} : vector<8x96xf32> to vector<8x8xf32>
    %72 = vector.extract_strided_slice %10 {offsets = [0, 56], sizes = [8, 8], strides = [1, 1]} : vector<8x96xf32> to vector<8x8xf32>
    %73 = vector.extract_strided_slice %10 {offsets = [0, 88], sizes = [8, 8], strides = [1, 1]} : vector<8x96xf32> to vector<8x8xf32>
    %cst_25 = arith.constant dense<0.000000e+00> : vector<8x8xf32>
    %74 = tpu.matmul %71, %72, %cst_25 {dimension_numbers = #tpu.dot_dimension_numbers<[1], [1], [0], [0], [0, 0, 1, 0], [], []>} : vector<8x8xf32>, vector<8x8xf32>, vector<8x8xf32> -> vector<8x8xf32>
    %cst_26 = arith.constant -1.000000e+30 : f32
    %75 = vector.broadcast %cst_26 : f32 to vector<8x8xf32>
    %76 = arith.select %5, %74, %75 : vector<8x8xi1>, vector<8x8xf32>
    %cst_27 = arith.constant dense<0xFF800000> : vector<8xf32>
    %77 = vector.multi_reduction <maximumf>, %76, %cst_27 [1] : vector<8x8xf32> to vector<8xf32>
    %78 = vector.shape_cast %77 : vector<8xf32> to vector<8x1xf32>
    %79 = vector.broadcast %78 : vector<8x1xf32> to vector<8x8xf32>
    %80 = arith.subf %76, %79 : vector<8x8xf32>
    %81 = math.exp %80 : vector<8x8xf32>
    %cst_28 = arith.constant dense<0.000000e+00> : vector<8xf32>
    %82 = vector.multi_reduction <add>, %81, %cst_28 [1] : vector<8x8xf32> to vector<8xf32>
    %83 = vector.shape_cast %82 : vector<8xf32> to vector<8x1xf32>
    %84 = tpu.reciprocal %83 {approx = true} : vector<8x1xf32> -> vector<8x1xf32>
    %85 = vector.broadcast %84 : vector<8x1xf32> to vector<8x8xf32>
    %86 = arith.mulf %81, %85 : vector<8x8xf32>
    %cst_29 = arith.constant dense<0.000000e+00> : vector<8x8xf32>
    %87 = tpu.matmul %86, %73, %cst_29 {dimension_numbers = #tpu.dot_dimension_numbers<[1], [0], [0], [1], [0, 0, 1, 1], [], []>} : vector<8x8xf32>, vector<8x8xf32>, vector<8x8xf32> -> vector<8x8xf32>
    %88 = vector.extract_strided_slice %6 {offsets = [24, 0], sizes = [8, 32], strides = [1, 1]} : vector<32x32xf32> to vector<8x32xf32>
    %cst_30 = arith.constant dense<0.000000e+00> : vector<8x32xf32>
    %89 = tpu.matmul %87, %88, %cst_30 {dimension_numbers = #tpu.dot_dimension_numbers<[1], [0], [0], [1], [0, 0, 1, 1], [], []>} : vector<8x8xf32>, vector<8x32xf32>, vector<8x32xf32> -> vector<8x32xf32>
    %90 = arith.addf %70, %89 : vector<8x32xf32>
    %c0_31 = arith.constant 0 : index
    %c0_32 = arith.constant 0 : index
    %91 = vector.load %arg5[%c0_31, %c0_32] : memref<16x32xf32, #tpu.memory_space<vmem>>, vector<8x32xf32>
    tpu.vector_store %arg5[%c0_31, %c0_32], %90 {strides = array<i32>} : memref<16x32xf32, #tpu.memory_space<vmem>>, vector<8x32xf32>,
    %92 = vector.extract_strided_slice %2 {offsets = [8, 0], sizes = [8, 96], strides = [1, 1]} : vector<16x96xf32> to vector<8x96xf32>
    %93 = vector.extract_strided_slice %92 {offsets = [0, 0], sizes = [8, 8], strides = [1, 1]} : vector<8x96xf32> to vector<8x8xf32>
    %94 = vector.extract_strided_slice %92 {offsets = [0, 32], sizes = [8, 8], strides = [1, 1]} : vector<8x96xf32> to vector<8x8xf32>
    %95 = vector.extract_strided_slice %92 {offsets = [0, 64], sizes = [8, 8], strides = [1, 1]} : vector<8x96xf32> to vector<8x8xf32>
    %cst_33 = arith.constant dense<0.000000e+00> : vector<8x8xf32>
    %96 = tpu.matmul %93, %94, %cst_33 {dimension_numbers = #tpu.dot_dimension_numbers<[1], [1], [0], [0], [0, 0, 1, 0], [], []>} : vector<8x8xf32>, vector<8x8xf32>, vector<8x8xf32> -> vector<8x8xf32>
    %cst_34 = arith.constant -1.000000e+30 : f32
    %97 = vector.broadcast %cst_34 : f32 to vector<8x8xf32>
    %98 = arith.select %5, %96, %97 : vector<8x8xi1>, vector<8x8xf32>
    %cst_35 = arith.constant dense<0xFF800000> : vector<8xf32>
    %99 = vector.multi_reduction <maximumf>, %98, %cst_35 [1] : vector<8x8xf32> to vector<8xf32>
    %100 = vector.shape_cast %99 : vector<8xf32> to vector<8x1xf32>
    %101 = vector.broadcast %100 : vector<8x1xf32> to vector<8x8xf32>
    %102 = arith.subf %98, %101 : vector<8x8xf32>
    %103 = math.exp %102 : vector<8x8xf32>
    %cst_36 = arith.constant dense<0.000000e+00> : vector<8xf32>
    %104 = vector.multi_reduction <add>, %103, %cst_36 [1] : vector<8x8xf32> to vector<8xf32>
    %105 = vector.shape_cast %104 : vector<8xf32> to vector<8x1xf32>
    %106 = tpu.reciprocal %105 {approx = true} : vector<8x1xf32> -> vector<8x1xf32>
    %107 = vector.broadcast %106 : vector<8x1xf32> to vector<8x8xf32>
    %108 = arith.mulf %103, %107 : vector<8x8xf32>
    %cst_37 = arith.constant dense<0.000000e+00> : vector<8x8xf32>
    %109 = tpu.matmul %108, %95, %cst_37 {dimension_numbers = #tpu.dot_dimension_numbers<[1], [0], [0], [1], [0, 0, 1, 1], [], []>} : vector<8x8xf32>, vector<8x8xf32>, vector<8x8xf32> -> vector<8x8xf32>
    %110 = vector.extract_strided_slice %6 {offsets = [0, 0], sizes = [8, 32], strides = [1, 1]} : vector<32x32xf32> to vector<8x32xf32>
    %cst_38 = arith.constant dense<0.000000e+00> : vector<8x32xf32>
    %111 = tpu.matmul %109, %110, %cst_38 {dimension_numbers = #tpu.dot_dimension_numbers<[1], [0], [0], [1], [0, 0, 1, 1], [], []>} : vector<8x8xf32>, vector<8x32xf32>, vector<8x32xf32> -> vector<8x32xf32>
    %112 = arith.addf %9, %111 : vector<8x32xf32>
    %113 = vector.extract_strided_slice %92 {offsets = [0, 8], sizes = [8, 8], strides = [1, 1]} : vector<8x96xf32> to vector<8x8xf32>
    %114 = vector.extract_strided_slice %92 {offsets = [0, 40], sizes = [8, 8], strides = [1, 1]} : vector<8x96xf32> to vector<8x8xf32>
    %115 = vector.extract_strided_slice %92 {offsets = [0, 72], sizes = [8, 8], strides = [1, 1]} : vector<8x96xf32> to vector<8x8xf32>
    %cst_39 = arith.constant dense<0.000000e+00> : vector<8x8xf32>
    %116 = tpu.matmul %113, %114, %cst_39 {dimension_numbers = #tpu.dot_dimension_numbers<[1], [1], [0], [0], [0, 0, 1, 0], [], []>} : vector<8x8xf32>, vector<8x8xf32>, vector<8x8xf32> -> vector<8x8xf32>
    %cst_40 = arith.constant -1.000000e+30 : f32
    %117 = vector.broadcast %cst_40 : f32 to vector<8x8xf32>
    %118 = arith.select %5, %116, %117 : vector<8x8xi1>, vector<8x8xf32>
    %cst_41 = arith.constant dense<0xFF800000> : vector<8xf32>
    %119 = vector.multi_reduction <maximumf>, %118, %cst_41 [1] : vector<8x8xf32> to vector<8xf32>
    %120 = vector.shape_cast %119 : vector<8xf32> to vector<8x1xf32>
    %121 = vector.broadcast %120 : vector<8x1xf32> to vector<8x8xf32>
    %122 = arith.subf %118, %121 : vector<8x8xf32>
    %123 = math.exp %122 : vector<8x8xf32>
    %cst_42 = arith.constant dense<0.000000e+00> : vector<8xf32>
    %124 = vector.multi_reduction <add>, %123, %cst_42 [1] : vector<8x8xf32> to vector<8xf32>
    %125 = vector.shape_cast %124 : vector<8xf32> to vector<8x1xf32>
    %126 = tpu.reciprocal %125 {approx = true} : vector<8x1xf32> -> vector<8x1xf32>
    %127 = vector.broadcast %126 : vector<8x1xf32> to vector<8x8xf32>
    %128 = arith.mulf %123, %127 : vector<8x8xf32>
    %cst_43 = arith.constant dense<0.000000e+00> : vector<8x8xf32>
    %129 = tpu.matmul %128, %115, %cst_43 {dimension_numbers = #tpu.dot_dimension_numbers<[1], [0], [0], [1], [0, 0, 1, 1], [], []>} : vector<8x8xf32>, vector<8x8xf32>, vector<8x8xf32> -> vector<8x8xf32>
    %130 = vector.extract_strided_slice %6 {offsets = [8, 0], sizes = [8, 32], strides = [1, 1]} : vector<32x32xf32> to vector<8x32xf32>
    %cst_44 = arith.constant dense<0.000000e+00> : vector<8x32xf32>
    %131 = tpu.matmul %129, %130, %cst_44 {dimension_numbers = #tpu.dot_dimension_numbers<[1], [0], [0], [1], [0, 0, 1, 1], [], []>} : vector<8x8xf32>, vector<8x32xf32>, vector<8x32xf32> -> vector<8x32xf32>
    %132 = arith.addf %112, %131 : vector<8x32xf32>
    %133 = vector.extract_strided_slice %92 {offsets = [0, 16], sizes = [8, 8], strides = [1, 1]} : vector<8x96xf32> to vector<8x8xf32>
    %134 = vector.extract_strided_slice %92 {offsets = [0, 48], sizes = [8, 8], strides = [1, 1]} : vector<8x96xf32> to vector<8x8xf32>
    %135 = vector.extract_strided_slice %92 {offsets = [0, 80], sizes = [8, 8], strides = [1, 1]} : vector<8x96xf32> to vector<8x8xf32>
    %cst_45 = arith.constant dense<0.000000e+00> : vector<8x8xf32>
    %136 = tpu.matmul %133, %134, %cst_45 {dimension_numbers = #tpu.dot_dimension_numbers<[1], [1], [0], [0], [0, 0, 1, 0], [], []>} : vector<8x8xf32>, vector<8x8xf32>, vector<8x8xf32> -> vector<8x8xf32>
    %cst_46 = arith.constant -1.000000e+30 : f32
    %137 = vector.broadcast %cst_46 : f32 to vector<8x8xf32>
    %138 = arith.select %5, %136, %137 : vector<8x8xi1>, vector<8x8xf32>
    %cst_47 = arith.constant dense<0xFF800000> : vector<8xf32>
    %139 = vector.multi_reduction <maximumf>, %138, %cst_47 [1] : vector<8x8xf32> to vector<8xf32>
    %140 = vector.shape_cast %139 : vector<8xf32> to vector<8x1xf32>
    %141 = vector.broadcast %140 : vector<8x1xf32> to vector<8x8xf32>
    %142 = arith.subf %138, %141 : vector<8x8xf32>
    %143 = math.exp %142 : vector<8x8xf32>
    %cst_48 = arith.constant dense<0.000000e+00> : vector<8xf32>
    %144 = vector.multi_reduction <add>, %143, %cst_48 [1] : vector<8x8xf32> to vector<8xf32>
    %145 = vector.shape_cast %144 : vector<8xf32> to vector<8x1xf32>
    %146 = tpu.reciprocal %145 {approx = true} : vector<8x1xf32> -> vector<8x1xf32>
    %147 = vector.broadcast %146 : vector<8x1xf32> to vector<8x8xf32>
    %148 = arith.mulf %143, %147 : vector<8x8xf32>
    %cst_49 = arith.constant dense<0.000000e+00> : vector<8x8xf32>
    %149 = tpu.matmul %148, %135, %cst_49 {dimension_numbers = #tpu.dot_dimension_numbers<[1], [0], [0], [1], [0, 0, 1, 1], [], []>} : vector<8x8xf32>, vector<8x8xf32>, vector<8x8xf32> -> vector<8x8xf32>
    %150 = vector.extract_strided_slice %6 {offsets = [16, 0], sizes = [8, 32], strides = [1, 1]} : vector<32x32xf32> to vector<8x32xf32>
    %cst_50 = arith.constant dense<0.000000e+00> : vector<8x32xf32>
    %151 = tpu.matmul %149, %150, %cst_50 {dimension_numbers = #tpu.dot_dimension_numbers<[1], [0], [0], [1], [0, 0, 1, 1], [], []>} : vector<8x8xf32>, vector<8x32xf32>, vector<8x32xf32> -> vector<8x32xf32>
    %152 = arith.addf %132, %151 : vector<8x32xf32>
    %153 = vector.extract_strided_slice %92 {offsets = [0, 24], sizes = [8, 8], strides = [1, 1]} : vector<8x96xf32> to vector<8x8xf32>
    %154 = vector.extract_strided_slice %92 {offsets = [0, 56], sizes = [8, 8], strides = [1, 1]} : vector<8x96xf32> to vector<8x8xf32>
    %155 = vector.extract_strided_slice %92 {offsets = [0, 88], sizes = [8, 8], strides = [1, 1]} : vector<8x96xf32> to vector<8x8xf32>
    %cst_51 = arith.constant dense<0.000000e+00> : vector<8x8xf32>
    %156 = tpu.matmul %153, %154, %cst_51 {dimension_numbers = #tpu.dot_dimension_numbers<[1], [1], [0], [0], [0, 0, 1, 0], [], []>} : vector<8x8xf32>, vector<8x8xf32>, vector<8x8xf32> -> vector<8x8xf32>
    %cst_52 = arith.constant -1.000000e+30 : f32
    %157 = vector.broadcast %cst_52 : f32 to vector<8x8xf32>
    %158 = arith.select %5, %156, %157 : vector<8x8xi1>, vector<8x8xf32>
    %cst_53 = arith.constant dense<0xFF800000> : vector<8xf32>
    %159 = vector.multi_reduction <maximumf>, %158, %cst_53 [1] : vector<8x8xf32> to vector<8xf32>
    %160 = vector.shape_cast %159 : vector<8xf32> to vector<8x1xf32>
    %161 = vector.broadcast %160 : vector<8x1xf32> to vector<8x8xf32>
    %162 = arith.subf %158, %161 : vector<8x8xf32>
    %163 = math.exp %162 : vector<8x8xf32>
    %cst_54 = arith.constant dense<0.000000e+00> : vector<8xf32>
    %164 = vector.multi_reduction <add>, %163, %cst_54 [1] : vector<8x8xf32> to vector<8xf32>
    %165 = vector.shape_cast %164 : vector<8xf32> to vector<8x1xf32>
    %166 = tpu.reciprocal %165 {approx = true} : vector<8x1xf32> -> vector<8x1xf32>
    %167 = vector.broadcast %166 : vector<8x1xf32> to vector<8x8xf32>
    %168 = arith.mulf %163, %167 : vector<8x8xf32>
    %cst_55 = arith.constant dense<0.000000e+00> : vector<8x8xf32>
    %169 = tpu.matmul %168, %155, %cst_55 {dimension_numbers = #tpu.dot_dimension_numbers<[1], [0], [0], [1], [0, 0, 1, 1], [], []>} : vector<8x8xf32>, vector<8x8xf32>, vector<8x8xf32> -> vector<8x8xf32>
    %170 = vector.extract_strided_slice %6 {offsets = [24, 0], sizes = [8, 32], strides = [1, 1]} : vector<32x32xf32> to vector<8x32xf32>
    %cst_56 = arith.constant dense<0.000000e+00> : vector<8x32xf32>
    %171 = tpu.matmul %169, %170, %cst_56 {dimension_numbers = #tpu.dot_dimension_numbers<[1], [0], [0], [1], [0, 0, 1, 1], [], []>} : vector<8x8xf32>, vector<8x32xf32>, vector<8x32xf32> -> vector<8x32xf32>
    %172 = arith.addf %152, %171 : vector<8x32xf32>
    %c8 = arith.constant 8 : index
    %c0_57 = arith.constant 0 : index
    %173 = vector.load %arg5[%c8, %c0_57] : memref<16x32xf32, #tpu.memory_space<vmem>>, vector<8x32xf32>
    tpu.vector_store %arg5[%c8, %c0_57], %172 {strides = array<i32>} : memref<16x32xf32, #tpu.memory_space<vmem>>, vector<8x32xf32>,
    return
  }
  func.func @transform_0(%arg0: i32) -> (i32, i32) {
    %c0_i32 = arith.constant 0 : i32
    %c0_i32_0 = arith.constant 0 : i32
    %c0_i32_1 = arith.constant 0 : i32
    return %c0_i32, %c0_i32_0 : i32, i32
  }
  func.func @transform_1(%arg0: i32) -> (i32, i32) {
    %c0_i32 = arith.constant 0 : i32
    %c0_i32_0 = arith.constant 0 : i32
    %c0_i32_1 = arith.constant 0 : i32
    return %c0_i32, %c0_i32_0 : i32, i32
  }
  func.func @transform_2(%arg0: i32) -> (i32, i32) {
    %c0_i32 = arith.constant 0 : i32
    %c0_i32_0 = arith.constant 0 : i32
    %c0_i32_1 = arith.constant 0 : i32
    return %c0_i32, %c0_i32_0 : i32, i32
  }
  func.func @transform_3(%arg0: i32) -> (i32, i32) {
    %c0_i32 = arith.constant 0 : i32
    %c0_i32_0 = arith.constant 0 : i32
    %c0_i32_1 = arith.constant 0 : i32
    return %c0_i32, %c0_i32_0 : i32, i32
  }
  func.func @transform_4(%arg0: i32) -> (i32, i32) {
    %c0_i32 = arith.constant 0 : i32
    %c0_i32_0 = arith.constant 0 : i32
    %c0_i32_1 = arith.constant 0 : i32
    return %c0_i32, %c0_i32_0 : i32, i32
  }
}

</mosaic_0001>

<bundles_post_ra>
// kernel: multi_head_attention.1
= control target key start
LH: loop header
LB: loop body
LE: loop exit
PB: predicated region body
PF: predicated region fallthrough
CT: control target
= control target key end

     0   :  { %v2345_v1 = vmov 0.0   ;;  %vm2346_vm0 = vmmov 0   ;;  %s2642_s0 = inlined_call_operand.vmem [shape: bf16[16,32], index: 0, kind: input, shape index: {}]   ;;  %s2643_s1 = inlined_call_operand.vmem [shape: bf16[32,96], index: 1, kind: input, shape index: {}]   ;;  %s2644_s2 = inlined_call_operand.vmem [shape: f32[32,32], index: 2, kind: input, shape index: {}]   ;;  %s2645_s3 = inlined_call_operand.vmem [shape: f32[1,32], index: 3, kind: input, shape index: {}]   ;;  %s2646_s4 = inlined_call_operand.hbm [shape: f32[16,32], index: 4, kind: output, shape index: {}]  }
   0x1   :  { %v2286_v0 = vld [vmem:[%s2643_s1] sm:$0xff]   ;;  %2128 = vmatprep.subr.bf16.mxu0 %v2345_v1  ;;  %2136 = vmatprep.subr.mxu1 %v2345_v1  ;;  %v2287_v2 = vld [vmem:[%s2643_s1 + $0x8] sm:$0xff]  }
   0x2   :  { %2129 = vmatpush3.bf16.msra.mxu0 %v2286_v0  ;;  %2132 = vmatprep.mubr.msk.bf16.mxu0 %vm2346_vm0, %v2345_v1 }
   0x3   :  { %2130 = vmatprep.subr.bf16.mxu0 %v2345_v1  ;;  %2138 = vmatprep.mubr.msk.f32.mxu1 %vm2346_vm0, %v2345_v1 }
   0x4   :  { %9 = vsyncpa [#allocation3], 0  ;;  %v2288_v3 = vld [vmem:[%s2642_s0] sm:$0xff]   ;;  %vm42_vm1 = vcmask 261120   ;;  %s2347_s1 = smov 80   ;;  %s2348_s21 = smov 88   ;;  %v87_v13 = vlaneseq }
   0x5   :  { %s2349_s0 = smov 112   ;;  %s2350_s22 = smov 120   ;;  %vm106_vm2 = vcmask 64512   ;;  %v2499_v58 = vld [vmem:[%s2644_s2] sm:$0xff] }
   0x6   :  { %2131 = vmatpush3.bf16.msra.mxu0 %v2287_v2  ;;  %s2351_s23 = smov 96   ;;  %v88_v14 = vshrl.u32 %v87_v13, 7  ;;  %v90_v15 = vand.u32 127, %v87_v13  ;;  %s2352_s24 = smov 48  }
   0x7   :  { %2151 = vmatprep.subr.mxu0 %v2345_v1  ;;  %s2353_s25 = smov 104   ;;  %s2354_s26 = smov 72  }
   0x8   :  { %vm2436_vm3 = vcmp.ge.s32.totalorder %v88_v14, %v90_v15  ;;  %s2355_s27 = smov 64   ;;  %s2356_s28 = smov 56  }
   0x9   :  { %2133 = vmatmul.mubr.msk.bf16.vlgmr.msra.gmra.mrb[0].mxu0 %vm42_vm1, %v2288_v3  ;;  %s2357_s5 = smov 40  }
   0xa   :  { %2153 = vmatprep.mubr.msk.f32.mxu0 %vm2346_vm0, %v2345_v1 }
  0xdc   :  { %v2406_v4 = vpop.f32.mrb[0].mxu0 }
  0xdd   :  { %585 = vrot.lane.b32.xlu1 %v2406_v4, %s2347_s1  ;;  %345 = vrot.lane.b32.xlu0 %v2406_v4, %s2348_s21  ;;  %v2134_v5 = vpop.f32.mrb[1].mxu0 }
  0xde   :  { %v2412_v6 = vpop.f32.mrb[2].mxu0 }
  0xdf   :  { %v2135_v7 = vpop.f32.mrb[3].mxu0 }
  0xe1   :  { %583 = vrot.lane.b32.xlu1 %v2406_v4, %s2349_s0  ;;  %343 = vrot.lane.b32.xlu0 %v2406_v4, %s2350_s22 }
  0xe5   :  { %104 = vrot.lane.b32.xlu1 %v2406_v4, %s2351_s23 }
 0x14f   :  { %v586_v8 = vpop.permute.xlu1 %585  ;;  %v346_v9 = vpop.permute.xlu0 %345 }
 0x150   :  { %2152 = vmatpush3.xpose.msk.msra.mxu0 %vm106_vm2, %v346_v9 }
 0x151   :  { %2166 = vmatprep.subr.mxu0 %v2345_v1 }
 0x153   :  { %v584_v10 = vpop.permute.xlu1 %583  ;;  %v344_v11 = vpop.permute.xlu0 %343 }
 0x154   :  { %2154 = vmatmul.mubr.msk.f32.vlgmr.msra.gmra.mrb[4].mxu0 %vm106_vm2, %v344_v11 }
 0x155   :  { %2167 = vmatpush3.xpose.msk.msra.mxu0 %vm106_vm2, %v586_v8  ;;  %2168 = vmatprep.mubr.msk.f32.mxu0 %vm2346_vm0, %v2345_v1 }
 0x156   :  { %2171 = vmatprep.subr.mxu0 %v2345_v1 }
 0x157   :  { %v105_v12 = vpop.permute.xlu1 %104 }
 0x158   :  { %2137 = vmatpush3.xpose.msk.msra.mxu1 %vm106_vm2, %v105_v12  ;;  %2169 = vmatmul.mubr.msk.f32.vlgmr.msra.gmra.mrb[6].mxu0 %vm106_vm2, %v584_v10 }
 0x159   :  { %2173 = vmatprep.mubr.msk.f32.mxu0 %vm2346_vm0, %v2345_v1  ;;  %2141 = vmatprep.subr.mxu1 %v2345_v1 }
 0x15b   :  { %2139 = vmatmul.mubr.msk.f32.vlgmr.msra.gmra.mrb[0].mxu1 %vm106_vm2, %v2406_v4 }
 0x15c   :  { %2143 = vmatprep.mubr.msk.f32.mxu1 %vm2346_vm0, %v2345_v1 }
 0x227   :  { %v417_v16 = vpop.f32.mrb[4].mxu0 }
 0x228   :  { %v2155_v17 = vpop.f32.mrb[5].mxu0  ;;  %v2462_v33 = vsel %vm2436_vm3, %v417_v16, -1e+30 }
 0x229   :  { %v422_v34 = vsel %vm106_vm2, %v2462_v33, -inf }
 0x22b   :  { %v657_v19 = vpop.f32.mrb[6].mxu0 }
 0x22c   :  { %v661_v20 = vsel %vm2436_vm3, %v657_v19, -1e+30  ;;  %v2170_v21 = vpop.f32.mrb[7].mxu0 }
 0x22d   :  { %v662_v22 = vsel %vm106_vm2, %v661_v20, -inf }
 0x22e   :  { %v177_v23 = vpop.f32.mrb[0].mxu1  ;;  %663 = vmax.xlane.f32.xlu0 %v662_v22 }
 0x22f   :  { %v2140_v24 = vpop.f32.mrb[1].mxu1  ;;  %v181_v31 = vsel %vm2436_vm3, %v177_v23, -1e+30 }
 0x230   :  { %v182_v32 = vsel %vm106_vm2, %v181_v31, -inf }
 0x244   :  { %673 = vrot.lane.b32.xlu0 %v2406_v4, %s2352_s24 }
 0x248   :  { %823 = vrot.lane.b32.xlu0 %v2406_v4, %s2353_s25 }
 0x24c   :  { %1065 = vrot.lane.b32.xlu0 %v2412_v6, %s2351_s23 }
 0x2bb   :  { %v664_v25 = vpop.xlane.xlu0 %663 }
 0x2bc   :  { %v665_v26 = vsub.f32 %v661_v20, %v664_v25 }
 0x2be   :  { %v666_v27 = vmul.f32 1.442695, %v665_v26 }
 0x2bf   :  { %v674_v28 = vpop.permute.xlu0 %673 }
 0x2c0   :  { %2289 = vpow2.f32 %v666_v27  ;;  %2172 = vmatpush3.msra.mxu0 %v674_v28 }
 0x2c1   :  { %2181 = vmatprep.subr.mxu0 %v2345_v1 }
 0x2c3   :  { %v824_v37 = vpop.permute.xlu0 %823 }
 0x2c7   :  { %v1066_v40 = vpop.permute.xlu0 %1065 }
 0x2ca   :  { %v2290_v29 = vpop.eup %2289 }
 0x2cb   :  { %v668_v30 = vsel %vm106_vm2, %v2290_v29, 0.0 }
 0x2cc   :  { %669 = vadd.xlane.f32.xlu1 %v668_v30  ;;  %v2540_v30 = vld [vmem:[%s2644_s2 + $0x8] sm:$0xff] }
 0x2dd   :  { %825 = vrot.lane.b32.xlu1 %v2406_v4, %s2354_s26 }
 0x301   :  { %183 = vmax.xlane.f32.xlu1 %v182_v32 }
 0x312   :  { %193 = vrot.lane.b32.xlu1 %v2406_v4, %s2355_s27 }
 0x316   :  { %1305 = vrot.lane.b32.xlu1 %v2412_v6, %s2348_s21 }
 0x33a   :  { %423 = vmax.xlane.f32.xlu1 %v422_v34 }
 0x34b   :  { %433 = vrot.lane.b32.xlu1 %v2406_v4, %s2356_s28 }
 0x359   :  { %v670_v35 = vpop.xlane.xlu1 %669 }
 0x35a   :  { %2291 = vrcp.f32 %v670_v35 }
 0x35d   :  { %v826_v39 = vpop.permute.xlu1 %825 }
 0x364   :  { %v2292_v36 = vpop.eup %2291 }
 0x365   :  { %v672_v38 = vmul.f32 %v2292_v36, %v2290_v29 }
 0x367   :  { %2174 = vmatmul.mubr.msk.f32.vlgmr.msra.gmra.mrb[8].mxu0 %vm106_vm2, %v672_v38 }
 0x368   :  { %2182 = vmatpush3.xpose.msk.msra.mxu0 %vm106_vm2, %v826_v39  ;;  %2183 = vmatprep.mubr.msk.f32.mxu0 %vm2346_vm0, %v2345_v1  ;;  %v2556_v39 = vld [vmem:[%s2644_s2 + $0x10] sm:$0xff] }
 0x369   :  { %2196 = vmatprep.subr.mxu0 %v2345_v1 }
 0x36b   :  { %2184 = vmatmul.mubr.msk.f32.vlgmr.msra.gmra.mrb[10].mxu0 %vm106_vm2, %v824_v37 }
 0x36c   :  { %2197 = vmatpush3.xpose.msk.msra.mxu0 %vm106_vm2, %v1066_v40  ;;  %2198 = vmatprep.mubr.msk.f32.mxu0 %vm2346_vm0, %v2345_v1 }
 0x36d   :  { %2201 = vmatprep.subr.mxu0 %v2345_v1 }
 0x36f   :  { %2199 = vmatmul.mubr.msk.f32.vlgmr.msra.gmra.mrb[12].mxu0 %vm106_vm2, %v2412_v6 }
 0x370   :  { %2203 = vmatprep.mubr.msk.f32.mxu0 %vm2346_vm0, %v2345_v1 }
 0x38e   :  { %v184_v41 = vpop.xlane.xlu1 %183 }
 0x38f   :  { %v185_v42 = vsub.f32 %v181_v31, %v184_v41 }
 0x391   :  { %v186_v43 = vmul.f32 1.442695, %v185_v42 }
 0x392   :  { %v194_v44 = vpop.permute.xlu1 %193 }
 0x393   :  { %2293 = vpow2.f32 %v186_v43  ;;  %2142 = vmatpush3.msra.mxu1 %v194_v44 }
 0x394   :  { %2146 = vmatprep.subr.mxu1 %v2345_v1 }
 0x396   :  { %v1306_v2 = vpop.permute.xlu1 %1305 }
 0x39d   :  { %v2294_v45 = vpop.eup %2293 }
 0x39e   :  { %v188_v46 = vsel %vm106_vm2, %v2294_v45, 0.0 }
 0x39f   :  { %189 = vadd.xlane.f32.xlu0 %v188_v46 }
 0x3c7   :  { %v424_v3 = vpop.xlane.xlu1 %423 }
 0x3c8   :  { %v425_v5 = vsub.f32 %v2462_v33, %v424_v3 }
 0x3ca   :  { %v426_v7 = vmul.f32 1.442695, %v425_v5 }
 0x3cb   :  { %v434_v9 = vpop.permute.xlu1 %433 }
 0x42c   :  { %v190_v47 = vpop.xlane.xlu0 %189 }
 0x42d   :  { %2295 = vrcp.f32 %v190_v47  ;;  %v2574_v47 = vld [vmem:[%s2644_s2 + $0x18] sm:$0xff] }
 0x437   :  { %v2296_v48 = vpop.eup %2295 }
 0x438   :  { %v192_v49 = vmul.f32 %v2296_v48, %v2294_v45 }
 0x43a   :  { %2144 = vmatmul.mubr.msk.f32.vlgmr.msra.gmra.mrb[2].mxu1 %vm106_vm2, %v192_v49  ;;  %v2485_v50 = vpop.f32.mrb[8].mxu0 }
 0x43b   :  { %v2175_v51 = vpop.f32.mrb[9].mxu0  ;;  %2148 = vmatprep.mubr.msk.f32.mxu1 %vm2346_vm0, %v2345_v1  ;;  %2147 = vmatpush3.msra.mxu1 %v2499_v58 }
 0x43c   :  { %2156 = vmatprep.subr.mxu1 %v2345_v1 }
 0x43e   :  { %v897_v52 = vpop.f32.mrb[10].mxu0 }
 0x43f   :  { %v2185_v53 = vpop.f32.mrb[11].mxu0  ;;  %v901_v13 = vsel %vm2436_vm3, %v897_v52, -1e+30 }
 0x440   :  { %v902_v14 = vsel %vm106_vm2, %v901_v13, -inf }
 0x442   :  { %v1137_v54 = vpop.f32.mrb[12].mxu0 }
 0x443   :  { %v1141_v55 = vsel %vm2436_vm3, %v1137_v54, -1e+30  ;;  %v2200_v56 = vpop.f32.mrb[13].mxu0 }
 0x444   :  { %v1142_v57 = vsel %vm106_vm2, %v1141_v55, -inf }
 0x445   :  { %1143 = vmax.xlane.f32.xlu0 %v1142_v57 }
 0x45b   :  { %1153 = vrot.lane.b32.xlu0 %v2412_v6, %s2355_s27 }
 0x45f   :  { %1303 = vrot.lane.b32.xlu0 %v2412_v6, %s2350_s22 }
 0x4d2   :  { %v1144_v59 = vpop.xlane.xlu0 %1143 }
 0x4d3   :  { %v1145_v60 = vsub.f32 %v1141_v55, %v1144_v59 }
 0x4d5   :  { %v1146_v61 = vmul.f32 1.442695, %v1145_v60 }
 0x4d6   :  { %v1154_v62 = vpop.permute.xlu0 %1153 }
 0x4d7   :  { %2297 = vpow2.f32 %v1146_v61  ;;  %2202 = vmatpush3.msra.mxu0 %v1154_v62 }
 0x4d8   :  { %2211 = vmatprep.subr.mxu0 %v2345_v1  ;;  %2299 = vpow2.f32 %v426_v7 }
 0x4da   :  { %v1304_v15 = vpop.permute.xlu0 %1303 }
 0x4e1   :  { %v2298_v63 = vpop.eup %2297 }
 0x4e2   :  { %v1148_v0 = vsel %vm106_vm2, %v2298_v63, 0.0  ;;  %v2300_v11 = vpop.eup %2299 }
 0x4e3   :  { %1149 = vadd.xlane.f32.xlu0 %v1148_v0  ;;  %v428_v12 = vsel %vm106_vm2, %v2300_v11, 0.0 }
 0x4f9   :  { %1545 = vrot.lane.b32.xlu0 %v2412_v6, %s2347_s1 }
 0x4fd   :  { %1543 = vrot.lane.b32.xlu0 %v2412_v6, %s2349_s0 }
 0x50d   :  { %v265_v8 = vpop.f32.mrb[2].mxu1 }
 0x50e   :  { %v2145_v10 = vpop.f32.mrb[3].mxu1  ;;  %2149 = vmatmul.mubr.msk.f32.vlgmr.msra.gmra.mrb[4].mxu1 %vm106_vm2, %v265_v8 }
 0x50f   :  { %2157 = vmatpush3.msra.mxu1 %v434_v9  ;;  %2158 = vmatprep.mubr.msk.f32.mxu1 %vm2346_vm0, %v2345_v1  ;;  %v2044_v9 = vld [vmem:[%s2645_s3] ss:$0 sm:$0xff]  ;;  %s2358_s3 = smov [#allocation2]  }
 0x510   :  { %2161 = vmatprep.subr.mxu1 %v2345_v1  ;;  %s2029_s13 = sshll.u32 %s2358_s3, 4  ;;  %s2030_s13 = int_to_ptr.vmem [resolvable:$true] %s2029_s13 }
 0x511   :  { %s2321_s14 = scalar_lea.vmem %s2030_s13, 256  ;;  %p2326_p1 = scmp.lt.s32.totalorder %s2030_s13, %s2030_s13 }
 0x512   :  { %p2322_p0 = scmp.ne.s32.totalorder %s2030_s13, %s2321_s14  ;;  %p2327_p2 = scmp.lt.s32.totalorder %s2321_s14, %s2321_s14 }
 0x514   :  { %p2328_p3 = por %p2327_p2, %p2326_p1 }
 0x516   :  { %p2329_p4 = pnand %p2328_p3, %p2322_p0 }
 0x51c   :  { %429 = vadd.xlane.f32.xlu0 %v428_v12 }
 0x520   :  { %903 = vmax.xlane.f32.xlu0 %v902_v14 }
 0x570   :  { %v1150_v16 = vpop.xlane.xlu0 %1149 }
 0x571   :  { %2301 = vrcp.f32 %v1150_v16 }
 0x574   :  { %v1546_v20 = vpop.permute.xlu0 %1545 }
 0x578   :  { %v1544_v21 = vpop.permute.xlu0 %1543 }
 0x57b   :  { %v2302_v17 = vpop.eup %2301 }
 0x57c   :  { %v1152_v19 = vmul.f32 %v2302_v17, %v2298_v63 }
 0x57e   :  { %2204 = vmatmul.mubr.msk.f32.vlgmr.msra.gmra.mrb[14].mxu0 %vm106_vm2, %v1152_v19 }
 0x57f   :  { %2212 = vmatpush3.xpose.msk.msra.mxu0 %vm106_vm2, %v1306_v2  ;;  %2213 = vmatprep.mubr.msk.f32.mxu0 %vm2346_vm0, %v2345_v1 }
 0x580   :  { %2226 = vmatprep.subr.mxu0 %v2345_v1 }
 0x582   :  { %2214 = vmatmul.mubr.msk.f32.vlgmr.msra.gmra.mrb[16].mxu0 %vm106_vm2, %v1304_v15 }
 0x583   :  { %2227 = vmatpush3.xpose.msk.msra.mxu0 %vm106_vm2, %v1546_v20  ;;  %2228 = vmatprep.mubr.msk.f32.mxu0 %vm2346_vm0, %v2345_v1 }
 0x584   :  { %2231 = vmatprep.subr.mxu0 %v2345_v1 }
 0x586   :  { %2229 = vmatmul.mubr.msk.f32.vlgmr.msra.gmra.mrb[18].mxu0 %vm106_vm2, %v1544_v21 }
 0x587   :  { %2233 = vmatprep.mubr.msk.f32.mxu0 %vm2346_vm0, %v2345_v1 }
 0x5a9   :  { %v430_v22 = vpop.xlane.xlu0 %429 }
 0x5aa   :  { %2303 = vrcp.f32 %v430_v22 }
 0x5ad   :  { %v904_v23 = vpop.xlane.xlu0 %903 }
 0x5ae   :  { %v905_v24 = vsub.f32 %v901_v13, %v904_v23 }
 0x5b0   :  { %v906_v25 = vmul.f32 1.442695, %v905_v24 }
 0x5b2   :  { %2305 = vpow2.f32 %v906_v25 }
 0x5b4   :  { %v2304_v26 = vpop.eup %2303 }
 0x5b5   :  { %v432_v27 = vmul.f32 %v2304_v26, %v2300_v11 }
 0x5b7   :  { %2159 = vmatmul.mubr.msk.f32.vlgmr.msra.gmra.mrb[6].mxu1 %vm106_vm2, %v432_v27 }
 0x5b8   :  { %2163 = vmatprep.mubr.msk.f32.mxu1 %vm2346_vm0, %v2345_v1  ;;  %2162 = vmatpush3.msra.mxu1 %v2540_v30 }
 0x5b9   :  { %2176 = vmatprep.subr.mxu1 %v2345_v1 }
 0x5bc   :  { %v2306_v28 = vpop.eup %2305 }
 0x5bd   :  { %v908_v29 = vsel %vm106_vm2, %v2306_v28, 0.0 }
 0x5be   :  { %909 = vadd.xlane.f32.xlu0 %v908_v29 }
 0x5d4   :  { %913 = vrot.lane.b32.xlu0 %v2406_v4, %s2357_s5 }
 0x64b   :  { %v910_v38 = vpop.xlane.xlu0 %909 }
 0x64c   :  { %2307 = vrcp.f32 %v910_v38 }
 0x64f   :  { %v914_v43 = vpop.permute.xlu0 %913 }
 0x651   :  { %v1225_v31 = vpop.f32.mrb[14].mxu0 }
 0x652   :  { %v2205_v32 = vpop.f32.mrb[15].mxu0 }
 0x655   :  { %v1377_v33 = vpop.f32.mrb[16].mxu0 }
 0x656   :  { %v2215_v34 = vpop.f32.mrb[17].mxu0  ;;  %v2308_v42 = vpop.eup %2307  ;;  %v1381_v52 = vsel %vm2436_vm3, %v1377_v33, -1e+30 }
 0x657   :  { %v912_v44 = vmul.f32 %v2308_v42, %v2306_v28  ;;  %v1382_v53 = vsel %vm106_vm2, %v1381_v52, -inf }
 0x659   :  { %v1617_v35 = vpop.f32.mrb[18].mxu0 }
 0x65a   :  { %v1621_v36 = vsel %vm2436_vm3, %v1617_v35, -1e+30  ;;  %v2230_v37 = vpop.f32.mrb[19].mxu0 }
 0x65b   :  { %v1622_v4 = vsel %vm106_vm2, %v1621_v36, -inf }
 0x65c   :  { %1623 = vmax.xlane.f32.xlu1 %v1622_v4 }
 0x66d   :  { %1633 = vrot.lane.b32.xlu1 %v2412_v6, %s2352_s24 }
 0x671   :  { %1785 = vrot.lane.b32.xlu1 %v2412_v6, %s2354_s26 }
 0x675   :  { %1783 = vrot.lane.b32.xlu1 %v2412_v6, %s2353_s25 }
 0x68a   :  { %v505_v40 = vpop.f32.mrb[6].mxu1 }
 0x68b   :  { %v2160_v41 = vpop.f32.mrb[7].mxu1  ;;  %2164 = vmatmul.mubr.msk.f32.vlgmr.msra.gmra.mrb[4].mxu1 %vm106_vm2, %v505_v40 }
 0x68c   :  { %2177 = vmatpush3.msra.mxu1 %v2556_v39  ;;  %2178 = vmatprep.mubr.msk.f32.mxu1 %vm2346_vm0, %v2345_v1 }
 0x68d   :  { %2186 = vmatprep.subr.mxu1 %v2345_v1 }
 0x693   :  { %2179 = vmatmul.mubr.msk.f32.vlgmr.msra.gmra.mrb[4].mxu1 %vm106_vm2, %v2485_v50 }
 0x694   :  { %2187 = vmatpush3.msra.mxu1 %v914_v43  ;;  %2188 = vmatprep.mubr.msk.f32.mxu1 %vm2346_vm0, %v2345_v1 }
 0x695   :  { %2191 = vmatprep.subr.mxu1 %v2345_v1 }
 0x697   :  { %2189 = vmatmul.mubr.msk.f32.vlgmr.msra.gmra.mrb[8].mxu1 %vm106_vm2, %v912_v44 }
 0x698   :  { %2193 = vmatprep.mubr.msk.f32.mxu1 %vm2346_vm0, %v2345_v1  ;;  %2192 = vmatpush3.msra.mxu1 %v2574_v47 }
 0x699   :  { %2206 = vmatprep.subr.mxu1 %v2345_v1 }
 0x6e9   :  { %v1624_v45 = vpop.xlane.xlu1 %1623 }
 0x6ea   :  { %v1625_v46 = vsub.f32 %v1621_v36, %v1624_v45 }
 0x6ec   :  { %v1626_v48 = vmul.f32 1.442695, %v1625_v46 }
 0x6ed   :  { %v1634_v49 = vpop.permute.xlu1 %1633 }
 0x6ee   :  { %2309 = vpow2.f32 %v1626_v48  ;;  %2232 = vmatpush3.msra.mxu0 %v1634_v49 }
 0x6ef   :  { %2241 = vmatprep.subr.mxu0 %v2345_v1 }
 0x6f1   :  { %v1786_v62 = vpop.permute.xlu1 %1785 }
 0x6f5   :  { %v1784_v0 = vpop.permute.xlu1 %1783 }
 0x6f8   :  { %v2310_v50 = vpop.eup %2309 }
 0x6f9   :  { %v1628_v51 = vsel %vm106_vm2, %v2310_v50, 0.0 }
 0x6fa   :  { %1629 = vadd.xlane.f32.xlu0 %v1628_v51 }
 0x6fe   :  { %1383 = vmax.xlane.f32.xlu0 %v1382_v53 }
 0x714   :  { %1393 = vrot.lane.b32.xlu0 %v2412_v6, %s2356_s28 }
 0x76a   :  { %v985_v54 = vpop.f32.mrb[8].mxu1 }
 0x76b   :  { %v2190_v55 = vpop.f32.mrb[9].mxu1  ;;  %2194 = vmatmul.mubr.msk.f32.vlgmr.msra.gmra.mrb[4].mxu1 %vm106_vm2, %v985_v54 }
 0x76c   :  { %2207 = vmatpush3.msra.mxu1 %v2499_v58  ;;  %2208 = vmatprep.mubr.msk.f32.mxu1 %vm2346_vm0, %v2345_v1 }
 0x76d   :  { %2216 = vmatprep.subr.mxu1 %v2345_v1 }
 0x76f   :  { %2209 = vmatmul.mubr.msk.f32.vlgmr.msra.gmra.mrb[10].mxu1 %vm106_vm2, %v1225_v31 }
 0x770   :  { %2218 = vmatprep.mubr.msk.f32.mxu1 %vm2346_vm0, %v2345_v1 }
 0x787   :  { %v1630_v56 = vpop.xlane.xlu0 %1629 }
 0x788   :  { %2311 = vrcp.f32 %v1630_v56 }
 0x78b   :  { %v1384_v57 = vpop.xlane.xlu0 %1383 }
 0x78c   :  { %v1385_v59 = vsub.f32 %v1381_v52, %v1384_v57 }
 0x78e   :  { %v1386_v60 = vmul.f32 1.442695, %v1385_v59 }
 0x78f   :  { %v1394_v61 = vpop.permute.xlu0 %1393 }
 0x790   :  { %2313 = vpow2.f32 %v1386_v60  ;;  %2217 = vmatpush3.msra.mxu1 %v1394_v61 }
 0x791   :  { %2221 = vmatprep.subr.mxu1 %v2345_v1 }
 0x792   :  { %v2312_v58 = vpop.eup %2311 }
 0x793   :  { %v1632_v63 = vmul.f32 %v2312_v58, %v2310_v50 }
 0x795   :  { %2234 = vmatmul.mubr.msk.f32.vlgmr.msra.gmra.mrb[20].mxu0 %vm106_vm2, %v1632_v63 }
 0x796   :  { %2242 = vmatpush3.xpose.msk.msra.mxu0 %vm106_vm2, %v1786_v62  ;;  %2243 = vmatprep.mubr.msk.f32.mxu0 %vm2346_vm0, %v2345_v1 }
 0x799   :  { %2244 = vmatmul.mubr.msk.f32.vlgmr.msra.gmra.mrb[22].mxu0 %vm106_vm2, %v1784_v0 }
 0x79a   :  { %v2314_v2 = vpop.eup %2313 }
 0x79b   :  { %v1388_v3 = vsel %vm106_vm2, %v2314_v2, 0.0 }
 0x79c   :  { %1389 = vadd.xlane.f32.xlu1 %v1388_v3 }
 0x829   :  { %v1390_v5 = vpop.xlane.xlu1 %1389 }
 0x82a   :  { %2315 = vrcp.f32 %v1390_v5 }
 0x834   :  { %v2316_v7 = vpop.eup %2315 }
 0x835   :  { %v1392_v8 = vmul.f32 %v2316_v7, %v2314_v2 }
 0x837   :  { %2219 = vmatmul.mubr.msk.f32.vlgmr.msra.gmra.mrb[12].mxu1 %vm106_vm2, %v1392_v8 }
 0x838   :  { %2222 = vmatpush3.msra.mxu1 %v2540_v30  ;;  %2223 = vmatprep.mubr.msk.f32.mxu1 %vm2346_vm0, %v2345_v1 }
 0x839   :  { %2236 = vmatprep.subr.mxu1 %v2345_v1 }
 0x83e   :  { %v1058_v10 = vpop.f32.mrb[4].mxu1 }
 0x83f   :  { %v2256_v11 = vadd.f32 %v2044_v9, %v1058_v10  ;;  %v2195_v12 = vpop.f32.mrb[5].mxu1 }
 0x841   :  { %1063 = vst.msk [vmem:[#allocation2] sm:$0xff] %vm42_vm1, %v2256_v11 }
 0x868   :  { %v1705_v13 = vpop.f32.mrb[20].mxu0 }
 0x869   :  { %v2235_v14 = vpop.f32.mrb[21].mxu0 }
 0x86c   :  { %v1857_v15 = vpop.f32.mrb[22].mxu0 }
 0x86d   :  { %v1861_v16 = vsel %vm2436_vm3, %v1857_v15, -1e+30  ;;  %v2245_v17 = vpop.f32.mrb[23].mxu0 }
 0x86e   :  { %v1862_v19 = vsel %vm106_vm2, %v1861_v16, -inf }
 0x86f   :  { %1863 = vmax.xlane.f32.xlu0 %v1862_v19 }
 0x8fc   :  { %v1864_v20 = vpop.xlane.xlu0 %1863 }
 0x8fd   :  { %v1865_v21 = vsub.f32 %v1861_v16, %v1864_v20 }
 0x8ff   :  { %v1866_v22 = vmul.f32 1.442695, %v1865_v21 }
 0x901   :  { %2317 = vpow2.f32 %v1866_v22 }
 0x90a   :  { %v1465_v23 = vpop.f32.mrb[12].mxu1 }
 0x90b   :  { %v2318_v24 = vpop.eup %2317  ;;  %v2220_v25 = vpop.f32.mrb[13].mxu1  ;;  %2224 = vmatmul.mubr.msk.f32.vlgmr.msra.gmra.mrb[10].mxu1 %vm106_vm2, %v1465_v23 }
 0x90c   :  { %v1868_v26 = vsel %vm106_vm2, %v2318_v24, 0.0  ;;  %2237 = vmatpush3.msra.mxu1 %v2556_v39  ;;  %2238 = vmatprep.mubr.msk.f32.mxu1 %vm2346_vm0, %v2345_v1 }
 0x90d   :  { %1869 = vadd.xlane.f32.xlu1 %v1868_v26  ;;  %2246 = vmatprep.subr.mxu1 %v2345_v1 }
 0x913   :  { %2239 = vmatmul.mubr.msk.f32.vlgmr.msra.gmra.mrb[10].mxu1 %vm106_vm2, %v1705_v13 }
 0x914   :  { %2248 = vmatprep.mubr.msk.f32.mxu1 %vm2346_vm0, %v2345_v1 }
 0x91e   :  { %1873 = vrot.lane.b32.xlu1 %v2412_v6, %s2357_s5 }
 0x99a   :  { %v1870_v18 = vpop.xlane.xlu1 %1869 }
 0x99b   :  { %2319 = vrcp.f32 %v1870_v18 }
 0x99e   :  { %v1874_v27 = vpop.permute.xlu1 %1873 }
 0x99f   :  { %2247 = vmatpush3.msra.mxu1 %v1874_v27 }
 0x9a0   :  { %2251 = vmatprep.subr.mxu1 %v2345_v1 }
 0x9a5   :  { %v2320_v28 = vpop.eup %2319 }
 0x9a6   :  { %v1872_v29 = vmul.f32 %v2320_v28, %v2318_v24 }
 0x9a8   :  { %2249 = vmatmul.mubr.msk.f32.vlgmr.msra.gmra.mrb[14].mxu1 %vm106_vm2, %v1872_v29 }
 0x9a9   :  { %2252 = vmatpush3.msra.mxu1 %v2574_v47  ;;  %2253 = vmatprep.mubr.msk.f32.mxu1 %vm2346_vm0, %v2345_v1 }
 0xa7b   :  { %v1945_v30 = vpop.f32.mrb[14].mxu1 }
 0xa7c   :  { %v2250_v31 = vpop.f32.mrb[15].mxu1  ;;  %2254 = vmatmul.mubr.msk.f32.vlgmr.msra.gmra.mrb[10].mxu1 %vm106_vm2, %v1945_v30 }
 0xb4f   :  { %v2018_v6 = vpop.f32.mrb[10].mxu1 }
 0xb50   :  { %v2257_v32 = vadd.f32 %v2044_v9, %v2018_v6  ;;  %v2255_v33 = vpop.f32.mrb[11].mxu1 }
 0xb52   :  { %2023 = vst.msk [vmem:[#allocation2 + $0x8] sm:$0xff] %vm42_vm1, %v2257_v32 }
 0xb53   :  { %2332 = shalt.err (!%p2329_p4)
}
 0xb54   :  { %s2333_s17 = scalar_lea.hbm %s2646_s4, 256 }
 0xb55   :  { %p2334_p5 = scmp.ne.s32.totalorder %s2646_s4, %s2333_s17  ;;  %p2337_p6 = scmp.lt.u32.totalorder %s2333_s17, %s2646_s4 }
 0xb57   :  { %p2339_p7 = pnand %p2337_p6, %p2334_p5 }
 0xb59   :  { %2342 = shalt.err (!%p2339_p7)
}
 0xb5a   :  { %s2359_s21 = smov 128   ;;  %s2360_s0 = smov 8  }
 0xb5b   :  { %2035 = dma.vmem_to_hbm [thread:$0]  %s2030_s13, 256, %s2646_s4, [#allocation3], %s2359_s21, %s2359_s21, %s2360_s0  }
 0xb5c   :  { %2343 = dma.done.wait [#allocation3], 256  }
 0xb5d   :  { %2344 = vsyncadd [#allocation3], 4294967040 }
 0xb5e   :  { %2039 = vsyncpa [#allocation3], 1 }

</bundles_post_ra>
